<compile_context>
chip_gen: v7x
topology: tpu7x:2x2x1
jax: 0.10.0
libtpu: 0.0.40
codegen_flags: <defaults>
</compile_context>

<pallas_src>
import functools
import math

import jax
import jax.numpy as jnp
from jax.experimental import pallas as pl
from jax.experimental.pallas import tpu as pltpu


# ----------------------------- kernel ---------------------------------------


def _layernorm(x, gamma, beta, eps=1e-5):
    mean = jnp.mean(x, axis=-1, keepdims=True)
    var = jnp.mean((x - mean) ** 2, axis=-1, keepdims=True)
    return (x - mean) * jax.lax.rsqrt(var + eps) * gamma + beta


def encoder_layer_kernel(
    x_ref,                # (R, E) f32, R = TB*S rows (batch-major, lane-dense)
    wqkv_ref, bqkv_ref,   # (E, 3E) cd, (1, 3E) f32   fused Q/K/V (1/sqrt(dk) folded into Q)
    wot_ref, bo_ref,      # (E, E)  cd, (1, E)  f32   attn output projection (pre-transposed)
    g1_ref, be1_ref,      # (1, E) f32 x2             LayerNorm 1
    w1t_ref, b1_ref,      # (E, F)  cd, (1, F)  f32   FFN in  (pre-transposed)
    w2t_ref, b2_ref,      # (F, E)  cd, (1, E)  f32   FFN out (pre-transposed)
    g2_ref, be2_ref,      # (1, E) f32 x2             LayerNorm 2
    o_ref,                # (R, E) f32
    attn_scratch,         # (TB, S, E) f32 VMEM — per-head lane-sliced accumulation
    *, num_heads, seq_len, batch_block, compute_dtype,
):
    x = x_ref[...]                                   # (R, E) f32
    R, E = x.shape
    H = num_heads
    dk = E // H
    TB, S = batch_block, seq_len
    cd = compute_dtype

    # --- fused Q/K/V projection: one tall lane-dense MXU matmul ----------------
    qkv = jnp.dot(x.astype(cd), wqkv_ref[...],
                  preferred_element_type=jnp.float32) + bqkv_ref[...]   # (R, 3E) f32

    # split into per-batch-element views; cast once to the matmul dtype
    q = qkv[:, :E].reshape(TB, S, E).astype(cd)
    k = qkv[:, E:2 * E].reshape(TB, S, E).astype(cd)
    v = qkv[:, 2 * E:].reshape(TB, S, E).astype(cd)

    # --- per-head attention, batched over TB; results written straight into ----
    # --- a VMEM scratch lane slice (no concatenate, bounded live ranges) -------
    # key_padding_mask intentionally not applied (non-in-place masked_fill in ref).
    # TODO(synk): flash-style KV tiling for long sequences instead of (S,S) scores.
    for h in range(H):
        sl = slice(h * dk, (h + 1) * dk)
        s_h = jnp.einsum('bsd,btd->bst', q[:, :, sl], k[:, :, sl],
                         preferred_element_type=jnp.float32)            # (TB, S, S)
        s_h = s_h - jnp.max(s_h, axis=-1, keepdims=True)
        e_h = jnp.exp(s_h)
        p_h = e_h / jnp.sum(e_h, axis=-1, keepdims=True)                # exact divide
        attn_scratch[:, :, sl] = jnp.einsum(
            'bst,btd->bsd', p_h.astype(cd), v[:, :, sl],
            preferred_element_type=jnp.float32)                         # (TB, S, dk)

    attn = attn_scratch[...].reshape(R, E)                              # head-major, (R, E)

    # --- output projection + residual + LayerNorm 1 (dropout == identity) ------
    attn_out = jnp.dot(attn.astype(cd), wot_ref[...],
                       preferred_element_type=jnp.float32) + bo_ref[...]
    y = _layernorm(attn_out + x, g1_ref[...], be1_ref[...])

    # --- FFN + residual + LayerNorm 2 -------------------------------------------
    h1 = jnp.maximum(
        jnp.dot(y.astype(cd), w1t_ref[...],
                preferred_element_type=jnp.float32) + b1_ref[...], 0.0)
    z = jnp.dot(h1.astype(cd), w2t_ref[...],
                preferred_element_type=jnp.float32) + b2_ref[...]
    o_ref[...] = _layernorm(z + y, g2_ref[...], be2_ref[...])


# ----------------------------- plumbing helpers -------------------------------


def _const_index_map(ndim):
    def idx(i):
        return (0,) * ndim
    return idx


def _choose_batch_block(B, S, target_rows=256):
    """Largest divisor TB of B with TB*S <= target_rows, keeping >=2 grid
    blocks when possible (v7x has 2 TensorCores per chip)."""
    divisors = [d for d in range(1, B + 1) if B % d == 0]
    fits = [d for d in divisors if d * S <= target_rows] or [1]
    multi = [d for d in fits if B // d >= 2]
    tb = max(multi) if multi else max(fits)
    if (tb * S) % 8 != 0 and tb != B:
        tb = B  # full-array block sidesteps the (8,128) divisibility rule
    return tb


def _vmem_limit_bytes(weight_inputs, rows, E, F, TB, S):
    weight_bytes = sum(int(w.size) * w.dtype.itemsize for w in weight_inputs)
    act_bytes = rows * E * 4
    scratch_bytes = 4 * (rows * 3 * E       # fused qkv
                         + 3 * TB * S * S   # one head's scores / exp / probs
                         + rows * F         # FFN hidden
                         + 6 * rows * E)    # misc temporaries
    need = 2 * weight_bytes + 4 * act_bytes + 2 * scratch_bytes + (4 << 20)
    try:
        cap = int(pltpu.get_tpu_info().vmem_capacity_bytes)
    except Exception:
        cap = 64 << 20                      # conservative (v7x per-TC VMEM)
    return int(min(max(need, 16 << 20), cap - (8 << 20)))


# ----------------------------- public wrapper ---------------------------------


def transformer_encoder_layer(state_sbe, params, num_heads,
                              encoder_padding_mask=None, *,
                              use_bf16_matmul=True):
    """state_sbe: (S, B, E) float32.  Returns (S, B, E) float32.

    encoder_padding_mask is accepted but intentionally ignored: the reference
    module calls the NON-in-place masked_fill and discards its result, so the
    mask has no effect on the output.
    """
    del encoder_padding_mask
    S, B, E = state_sbe.shape
    H = num_heads
    dk = E // H
    F = params['w1'].shape[0]
    cd = jnp.bfloat16 if use_bf16_matmul else jnp.float32
    scale = 1.0 / math.sqrt(dk)

    # Pre-arrange weights on the host: fused QKV (with 1/sqrt(dk) folded into
    # the Q columns + bias), all matmul weights pre-transposed to (in, out) and
    # stored in the matmul compute dtype; biases / LN params stay f32.
    wqkv = jnp.concatenate(
        [params['wq'].T * scale, params['wk'].T, params['wv'].T],
        axis=1).astype(cd)                                            # (E, 3E)
    bqkv = jnp.concatenate(
        [params['bq'] * scale, params['bk'], params['bv']]
    ).reshape(1, 3 * E).astype(jnp.float32)
    wot = params['wo'].T.astype(cd)                                   # (E, E)
    bo = params['bo'].reshape(1, E).astype(jnp.float32)
    g1 = params['g1'].reshape(1, E).astype(jnp.float32)
    be1 = params['be1'].reshape(1, E).astype(jnp.float32)
    w1t = params['w1'].T.astype(cd)                                   # (E, F)
    b1 = params['b1'].reshape(1, F).astype(jnp.float32)
    w2t = params['w2'].T.astype(cd)                                   # (F, E)
    b2 = params['b2'].reshape(1, E).astype(jnp.float32)
    g2 = params['g2'].reshape(1, E).astype(jnp.float32)
    be2 = params['be2'].reshape(1, E).astype(jnp.float32)

    weight_inputs = [wqkv, bqkv, wot, bo, g1, be1, w1t, b1, w2t, b2, g2, be2]

    # Batch-block the grid: TB batch elements per step -> (TB*S, E) row slab.
    TB = _choose_batch_block(B, S)
    rows = TB * S
    num_blocks = B // TB

    # Batch-major, lane-dense layout: one XLA transpose in the wrapper, then
    # every grid step reads/writes a contiguous (TB*S, E) slab.
    x = jnp.transpose(state_sbe, (1, 0, 2)).reshape(B * S, E)

    vmem_limit = _vmem_limit_bytes(weight_inputs, rows, E, F, TB, S)

    kernel = functools.partial(
        encoder_layer_kernel,
        num_heads=H, seq_len=S, batch_block=TB, compute_dtype=cd)

    act_spec = pl.BlockSpec((rows, E), lambda i: (i, 0))
    in_specs = [act_spec] + [
        pl.BlockSpec(w.shape, _const_index_map(w.ndim)) for w in weight_inputs]

    out = pl.pallas_call(
        kernel,
        out_shape=jax.ShapeDtypeStruct((B * S, E), jnp.float32),
        grid=(num_blocks,),
        in_specs=in_specs,
        out_specs=act_spec,
        scratch_shapes=[pltpu.VMEM((TB, S, E), jnp.float32)],
        compiler_params=pltpu.CompilerParams(
            dimension_semantics=("parallel",),
            vmem_limit_bytes=vmem_limit),
    )(x, *weight_inputs)

    return jnp.transpose(out.reshape(B, S, E), (1, 0, 2))             # (S, B, E)


# ----------------------------- reference (pure JAX) ---------------------------


def reference_layer(state, p, H):
    S, B, E = state.shape
    dk = E // H

    def linear(x, w, b):
        return x @ w.T + b

    q = linear(state, p['wq'], p['bq'])
    k = linear(state, p['wk'], p['bk'])
    v = linear(state, p['wv'], p['bv'])

    def to_heads(t):
        return t.reshape(S, B, H, dk).transpose(2, 1, 0, 3).reshape(H * B, S, dk)

    Q, K, V = to_heads(q), to_heads(k), to_heads(v)
    scores = jnp.einsum('nsd,ntd->nst', Q, K) / math.sqrt(dk)
    w = jax.nn.softmax(scores, axis=-1)
    attn = jnp.einsum('nst,ntd->nsd', w, V)
    attn = attn.reshape(H, B, S, dk).transpose(2, 1, 0, 3).reshape(S, B, E)
    attn = linear(attn, p['wo'], p['bo'])

    y = attn + state
    y = _layernorm(y, p['g1'], p['be1'])
    h = jax.nn.relu(linear(y, p['w1'], p['b1']))
    z = linear(h, p['w2'], p['b2'])
    z = z + y
    z = _layernorm(z, p['g2'], p['be2'])
    return z


# ----------------------------- parameter init ---------------------------------


def xavier_uniform(key, shape, gain=1.0):
    # shape is (out_features, in_features), matching nn.Linear.weight
    fan_out, fan_in = shape
    a = gain * math.sqrt(6.0 / (fan_in + fan_out))
    return jax.random.uniform(key, shape, jnp.float32, -a, a)


def init_params(key, E, H, F):
    ks = jax.random.split(key, 12)
    g = 1.0 / math.sqrt(2.0)
    bound = 1.0 / math.sqrt(E)
    return {
        'wq': xavier_uniform(ks[0], (E, E), g),
        'wk': xavier_uniform(ks[1], (E, E), g),
        'wv': xavier_uniform(ks[2], (E, E), g),
        'bq': jax.random.uniform(ks[3], (E,), jnp.float32, -bound, bound),
        'bk': jax.random.uniform(ks[4], (E,), jnp.float32, -bound, bound),
        'bv': jax.random.uniform(ks[5], (E,), jnp.float32, -bound, bound),
        'wo': xavier_uniform(ks[6], (E, E)),
        'bo': jnp.zeros((E,), jnp.float32),
        'g1': jnp.ones((E,), jnp.float32),
        'be1': jnp.zeros((E,), jnp.float32),
        'w1': xavier_uniform(ks[7], (F, E)),
        'b1': jnp.zeros((F,), jnp.float32),
        'w2': xavier_uniform(ks[8], (E, F)),
        'b2': jnp.zeros((E,), jnp.float32),
        'g2': jnp.ones((E,), jnp.float32),
        'be2': jnp.zeros((E,), jnp.float32),
    }


# ----------------------------- main -------------------------------------------

if __name__ == "__main__":
    S, B, E, H, F = 8, 2, 32, 4, 64  # seq, batch, embed, heads, ffn

    key = jax.random.PRNGKey(0)
    k_state, k_params = jax.random.split(key)
    state = jax.random.normal(k_state, (S, B, E), jnp.float32)
    params = init_params(k_params, E, H, F)

    ref = reference_layer(state, params, H)

    # f32 matmul path: tight numerical check against the pure-JAX reference.
    out_f32 = jax.block_until_ready(
        transformer_encoder_layer(state, params, H, use_bf16_matmul=False))
    assert out_f32.shape == (S, B, E)
    err_f32 = float(jnp.max(jnp.abs(out_f32 - ref)))
    assert jnp.allclose(out_f32, ref, atol=5e-3, rtol=5e-3), \
        f"f32 path mismatch vs reference (max abs err {err_f32:.2e})"

    # bf16 matmul path (production default): looser tolerance from bf16 operands.
    out_bf16 = jax.block_until_ready(
        transformer_encoder_layer(state, params, H, use_bf16_matmul=True))
    assert out_bf16.shape == (S, B, E)
    err_bf16 = float(jnp.max(jnp.abs(out_bf16 - ref)))
    assert jnp.allclose(out_bf16, ref, atol=5e-2, rtol=5e-2), \
        f"bf16 path mismatch vs reference (max abs err {err_bf16:.2e})"

    print("KERNEL_OK")
</pallas_src>

<mosaic_0001>
module attributes {stable_mosaic.version = 11 : i64} {
  func.func @encoder_layer_kernel(%arg0: i32, %arg1: memref<8x32xf32, #tpu.memory_space<vmem>>, %arg2: memref<32x96xf32, #tpu.memory_space<vmem>>, %arg3: memref<1x96xf32, #tpu.memory_space<vmem>>, %arg4: memref<32x32xf32, #tpu.memory_space<vmem>>, %arg5: memref<1x32xf32, #tpu.memory_space<vmem>>, %arg6: memref<1x32xf32, #tpu.memory_space<vmem>>, %arg7: memref<1x32xf32, #tpu.memory_space<vmem>>, %arg8: memref<32x64xf32, #tpu.memory_space<vmem>>, %arg9: memref<1x64xf32, #tpu.memory_space<vmem>>, %arg10: memref<64x32xf32, #tpu.memory_space<vmem>>, %arg11: memref<1x32xf32, #tpu.memory_space<vmem>>, %arg12: memref<1x32xf32, #tpu.memory_space<vmem>>, %arg13: memref<1x32xf32, #tpu.memory_space<vmem>>, %arg14: memref<8x32xf32, #tpu.memory_space<vmem>>, %arg15: memref<1x8x32xf32, #tpu.memory_space<vmem>>) attributes {dimension_semantics = [#tpu.dimension_semantics<parallel>], iteration_bounds = array<i64: 2>, scalar_prefetch = 0 : i64, scratch_operands = 1 : i64, tpu.core_type = #tpu.core_type<tc>, window_params = [{transform_indices = @transform_0, window_bounds = array<i64: 8, 32>}, {pipeline_mode = #tpu.pipeline_mode<synchronous>, transform_indices = @transform_1, window_bounds = array<i64: 32, 96>}, {pipeline_mode = #tpu.pipeline_mode<synchronous>, transform_indices = @transform_2, window_bounds = array<i64: 1, 96>}, {pipeline_mode = #tpu.pipeline_mode<synchronous>, transform_indices = @transform_3, window_bounds = array<i64: 32, 32>}, {pipeline_mode = #tpu.pipeline_mode<synchronous>, transform_indices = @transform_4, window_bounds = array<i64: 1, 32>}, {pipeline_mode = #tpu.pipeline_mode<synchronous>, transform_indices = @transform_5, window_bounds = array<i64: 1, 32>}, {pipeline_mode = #tpu.pipeline_mode<synchronous>, transform_indices = @transform_6, window_bounds = array<i64: 1, 32>}, {pipeline_mode = #tpu.pipeline_mode<synchronous>, transform_indices = @transform_7, window_bounds = array<i64: 32, 64>}, {pipeline_mode = #tpu.pipeline_mode<synchronous>, transform_indices = @transform_8, window_bounds = array<i64: 1, 64>}, {pipeline_mode = #tpu.pipeline_mode<synchronous>, transform_indices = @transform_9, window_bounds = array<i64: 64, 32>}, {pipeline_mode = #tpu.pipeline_mode<synchronous>, transform_indices = @transform_10, window_bounds = array<i64: 1, 32>}, {pipeline_mode = #tpu.pipeline_mode<synchronous>, transform_indices = @transform_11, window_bounds = array<i64: 1, 32>}, {pipeline_mode = #tpu.pipeline_mode<synchronous>, transform_indices = @transform_12, window_bounds = array<i64: 1, 32>}, {transform_indices = @transform_13, window_bounds = array<i64: 8, 32>}]} {
    %c0 = arith.constant 0 : index
    %c0_0 = arith.constant 0 : index
    %0 = vector.load %arg1[%c0, %c0_0] : memref<8x32xf32, #tpu.memory_space<vmem>>, vector<8x32xf32>
    %c0_1 = arith.constant 0 : index
    %c0_2 = arith.constant 0 : index
    %1 = vector.load %arg2[%c0_1, %c0_2] : memref<32x96xf32, #tpu.memory_space<vmem>>, vector<32x96xf32>
    %cst = arith.constant dense<0.000000e+00> : vector<8x96xf32>
    %2 = tpu.matmul %0, %1, %cst {dimension_numbers = #tpu.dot_dimension_numbers<[1], [0], [0], [1], [0, 0, 1, 1], [], []>} : vector<8x32xf32>, vector<32x96xf32>, vector<8x96xf32> -> vector<8x96xf32>
    %c0_3 = arith.constant 0 : index
    %c0_4 = arith.constant 0 : index
    %3 = vector.load %arg3[%c0_3, %c0_4] : memref<1x96xf32, #tpu.memory_space<vmem>>, vector<1x96xf32>
    %4 = vector.broadcast %3 : vector<1x96xf32> to vector<8x96xf32>
    %5 = arith.addf %2, %4 : vector<8x96xf32>
    %6 = vector.extract_strided_slice %5 {offsets = [0, 0], sizes = [8, 32], strides = [1, 1]} : vector<8x96xf32> to vector<8x32xf32>
    %7 = vector.shape_cast %6 : vector<8x32xf32> to vector<1x8x32xf32>
    %8 = vector.extract_strided_slice %5 {offsets = [0, 32], sizes = [8, 32], strides = [1, 1]} : vector<8x96xf32> to vector<8x32xf32>
    %9 = vector.shape_cast %8 : vector<8x32xf32> to vector<1x8x32xf32>
    %10 = vector.extract_strided_slice %5 {offsets = [0, 64], sizes = [8, 32], strides = [1, 1]} : vector<8x96xf32> to vector<8x32xf32>
    %11 = vector.shape_cast %10 : vector<8x32xf32> to vector<1x8x32xf32>
    %12 = vector.extract_strided_slice %7 {offsets = [0, 0, 0], sizes = [1, 8, 8], strides = [1, 1, 1]} : vector<1x8x32xf32> to vector<1x8x8xf32>
    %13 = vector.extract_strided_slice %9 {offsets = [0, 0, 0], sizes = [1, 8, 8], strides = [1, 1, 1]} : vector<1x8x32xf32> to vector<1x8x8xf32>
    "tpu.trace_start"() <{level = 10 : i32, message = "bsd,btd->bst"}> : () -> ()
    %cst_5 = arith.constant dense<0.000000e+00> : vector<1x8x8xf32>
    %14 = tpu.matmul %12, %13, %cst_5 {dimension_numbers = #tpu.dot_dimension_numbers<[2], [2], [1], [1], [0, 0, 0, 1, 1, 1], [0], [0]>} : vector<1x8x8xf32>, vector<1x8x8xf32>, vector<1x8x8xf32> -> vector<1x8x8xf32>
    "tpu.trace_stop"() : () -> ()
    %cst_6 = arith.constant dense<0xFF800000> : vector<1x8xf32>
    %15 = vector.multi_reduction <maximumf>, %14, %cst_6 [2] : vector<1x8x8xf32> to vector<1x8xf32>
    %16 = vector.shape_cast %15 : vector<1x8xf32> to vector<1x8x1xf32>
    %17 = vector.broadcast %16 : vector<1x8x1xf32> to vector<1x8x8xf32>
    %18 = arith.subf %14, %17 : vector<1x8x8xf32>
    %19 = math.exp %18 : vector<1x8x8xf32>
    %cst_7 = arith.constant dense<0.000000e+00> : vector<1x8xf32>
    %20 = vector.multi_reduction <add>, %19, %cst_7 [2] : vector<1x8x8xf32> to vector<1x8xf32>
    %21 = vector.shape_cast %20 : vector<1x8xf32> to vector<1x8x1xf32>
    %22 = vector.broadcast %21 : vector<1x8x1xf32> to vector<1x8x8xf32>
    %23 = arith.divf %19, %22 : vector<1x8x8xf32>
    %24 = vector.extract_strided_slice %11 {offsets = [0, 0, 0], sizes = [1, 8, 8], strides = [1, 1, 1]} : vector<1x8x32xf32> to vector<1x8x8xf32>
    "tpu.trace_start"() <{level = 10 : i32, message = "bst,btd->bsd"}> : () -> ()
    %cst_8 = arith.constant dense<0.000000e+00> : vector<1x8x8xf32>
    %25 = tpu.matmul %23, %24, %cst_8 {dimension_numbers = #tpu.dot_dimension_numbers<[2], [1], [1], [2], [0, 0, 0, 1, 1, 2], [0], [0]>} : vector<1x8x8xf32>, vector<1x8x8xf32>, vector<1x8x8xf32> -> vector<1x8x8xf32>
    "tpu.trace_stop"() : () -> ()
    %c0_9 = arith.constant 0 : index
    %c0_10 = arith.constant 0 : index
    %c0_11 = arith.constant 0 : index
    %26 = vector.load %arg15[%c0_9, %c0_10, %c0_11] : memref<1x8x32xf32, #tpu.memory_space<vmem>>, vector<1x8x8xf32>
    tpu.vector_store %arg15[%c0_9, %c0_10, %c0_11], %25 {strides = array<i32>} : memref<1x8x32xf32, #tpu.memory_space<vmem>>, vector<1x8x8xf32>,
    %27 = vector.extract_strided_slice %7 {offsets = [0, 0, 8], sizes = [1, 8, 8], strides = [1, 1, 1]} : vector<1x8x32xf32> to vector<1x8x8xf32>
    %28 = vector.extract_strided_slice %9 {offsets = [0, 0, 8], sizes = [1, 8, 8], strides = [1, 1, 1]} : vector<1x8x32xf32> to vector<1x8x8xf32>
    "tpu.trace_start"() <{level = 10 : i32, message = "bsd,btd->bst"}> : () -> ()
    %cst_12 = arith.constant dense<0.000000e+00> : vector<1x8x8xf32>
    %29 = tpu.matmul %27, %28, %cst_12 {dimension_numbers = #tpu.dot_dimension_numbers<[2], [2], [1], [1], [0, 0, 0, 1, 1, 1], [0], [0]>} : vector<1x8x8xf32>, vector<1x8x8xf32>, vector<1x8x8xf32> -> vector<1x8x8xf32>
    "tpu.trace_stop"() : () -> ()
    %cst_13 = arith.constant dense<0xFF800000> : vector<1x8xf32>
    %30 = vector.multi_reduction <maximumf>, %29, %cst_13 [2] : vector<1x8x8xf32> to vector<1x8xf32>
    %31 = vector.shape_cast %30 : vector<1x8xf32> to vector<1x8x1xf32>
    %32 = vector.broadcast %31 : vector<1x8x1xf32> to vector<1x8x8xf32>
    %33 = arith.subf %29, %32 : vector<1x8x8xf32>
    %34 = math.exp %33 : vector<1x8x8xf32>
    %cst_14 = arith.constant dense<0.000000e+00> : vector<1x8xf32>
    %35 = vector.multi_reduction <add>, %34, %cst_14 [2] : vector<1x8x8xf32> to vector<1x8xf32>
    %36 = vector.shape_cast %35 : vector<1x8xf32> to vector<1x8x1xf32>
    %37 = vector.broadcast %36 : vector<1x8x1xf32> to vector<1x8x8xf32>
    %38 = arith.divf %34, %37 : vector<1x8x8xf32>
    %39 = vector.extract_strided_slice %11 {offsets = [0, 0, 8], sizes = [1, 8, 8], strides = [1, 1, 1]} : vector<1x8x32xf32> to vector<1x8x8xf32>
    "tpu.trace_start"() <{level = 10 : i32, message = "bst,btd->bsd"}> : () -> ()
    %cst_15 = arith.constant dense<0.000000e+00> : vector<1x8x8xf32>
    %40 = tpu.matmul %38, %39, %cst_15 {dimension_numbers = #tpu.dot_dimension_numbers<[2], [1], [1], [2], [0, 0, 0, 1, 1, 2], [0], [0]>} : vector<1x8x8xf32>, vector<1x8x8xf32>, vector<1x8x8xf32> -> vector<1x8x8xf32>
    "tpu.trace_stop"() : () -> ()
    %c0_16 = arith.constant 0 : index
    %c0_17 = arith.constant 0 : index
    %c8 = arith.constant 8 : index
    %41 = vector.load %arg15[%c0_16, %c0_17, %c8] : memref<1x8x32xf32, #tpu.memory_space<vmem>>, vector<1x8x8xf32>
    tpu.vector_store %arg15[%c0_16, %c0_17, %c8], %40 {strides = array<i32>} : memref<1x8x32xf32, #tpu.memory_space<vmem>>, vector<1x8x8xf32>,
    %42 = vector.extract_strided_slice %7 {offsets = [0, 0, 16], sizes = [1, 8, 8], strides = [1, 1, 1]} : vector<1x8x32xf32> to vector<1x8x8xf32>
    %43 = vector.extract_strided_slice %9 {offsets = [0, 0, 16], sizes = [1, 8, 8], strides = [1, 1, 1]} : vector<1x8x32xf32> to vector<1x8x8xf32>
    "tpu.trace_start"() <{level = 10 : i32, message = "bsd,btd->bst"}> : () -> ()
    %cst_18 = arith.constant dense<0.000000e+00> : vector<1x8x8xf32>
    %44 = tpu.matmul %42, %43, %cst_18 {dimension_numbers = #tpu.dot_dimension_numbers<[2], [2], [1], [1], [0, 0, 0, 1, 1, 1], [0], [0]>} : vector<1x8x8xf32>, vector<1x8x8xf32>, vector<1x8x8xf32> -> vector<1x8x8xf32>
    "tpu.trace_stop"() : () -> ()
    %cst_19 = arith.constant dense<0xFF800000> : vector<1x8xf32>
    %45 = vector.multi_reduction <maximumf>, %44, %cst_19 [2] : vector<1x8x8xf32> to vector<1x8xf32>
    %46 = vector.shape_cast %45 : vector<1x8xf32> to vector<1x8x1xf32>
    %47 = vector.broadcast %46 : vector<1x8x1xf32> to vector<1x8x8xf32>
    %48 = arith.subf %44, %47 : vector<1x8x8xf32>
    %49 = math.exp %48 : vector<1x8x8xf32>
    %cst_20 = arith.constant dense<0.000000e+00> : vector<1x8xf32>
    %50 = vector.multi_reduction <add>, %49, %cst_20 [2] : vector<1x8x8xf32> to vector<1x8xf32>
    %51 = vector.shape_cast %50 : vector<1x8xf32> to vector<1x8x1xf32>
    %52 = vector.broadcast %51 : vector<1x8x1xf32> to vector<1x8x8xf32>
    %53 = arith.divf %49, %52 : vector<1x8x8xf32>
    %54 = vector.extract_strided_slice %11 {offsets = [0, 0, 16], sizes = [1, 8, 8], strides = [1, 1, 1]} : vector<1x8x32xf32> to vector<1x8x8xf32>
    "tpu.trace_start"() <{level = 10 : i32, message = "bst,btd->bsd"}> : () -> ()
    %cst_21 = arith.constant dense<0.000000e+00> : vector<1x8x8xf32>
    %55 = tpu.matmul %53, %54, %cst_21 {dimension_numbers = #tpu.dot_dimension_numbers<[2], [1], [1], [2], [0, 0, 0, 1, 1, 2], [0], [0]>} : vector<1x8x8xf32>, vector<1x8x8xf32>, vector<1x8x8xf32> -> vector<1x8x8xf32>
    "tpu.trace_stop"() : () -> ()
    %c0_22 = arith.constant 0 : index
    %c0_23 = arith.constant 0 : index
    %c16 = arith.constant 16 : index
    %56 = vector.load %arg15[%c0_22, %c0_23, %c16] : memref<1x8x32xf32, #tpu.memory_space<vmem>>, vector<1x8x8xf32>
    tpu.vector_store %arg15[%c0_22, %c0_23, %c16], %55 {strides = array<i32>} : memref<1x8x32xf32, #tpu.memory_space<vmem>>, vector<1x8x8xf32>,
    %57 = vector.extract_strided_slice %7 {offsets = [0, 0, 24], sizes = [1, 8, 8], strides = [1, 1, 1]} : vector<1x8x32xf32> to vector<1x8x8xf32>
    %58 = vector.extract_strided_slice %9 {offsets = [0, 0, 24], sizes = [1, 8, 8], strides = [1, 1, 1]} : vector<1x8x32xf32> to vector<1x8x8xf32>
    "tpu.trace_start"() <{level = 10 : i32, message = "bsd,btd->bst"}> : () -> ()
    %cst_24 = arith.constant dense<0.000000e+00> : vector<1x8x8xf32>
    %59 = tpu.matmul %57, %58, %cst_24 {dimension_numbers = #tpu.dot_dimension_numbers<[2], [2], [1], [1], [0, 0, 0, 1, 1, 1], [0], [0]>} : vector<1x8x8xf32>, vector<1x8x8xf32>, vector<1x8x8xf32> -> vector<1x8x8xf32>
    "tpu.trace_stop"() : () -> ()
    %cst_25 = arith.constant dense<0xFF800000> : vector<1x8xf32>
    %60 = vector.multi_reduction <maximumf>, %59, %cst_25 [2] : vector<1x8x8xf32> to vector<1x8xf32>
    %61 = vector.shape_cast %60 : vector<1x8xf32> to vector<1x8x1xf32>
    %62 = vector.broadcast %61 : vector<1x8x1xf32> to vector<1x8x8xf32>
    %63 = arith.subf %59, %62 : vector<1x8x8xf32>
    %64 = math.exp %63 : vector<1x8x8xf32>
    %cst_26 = arith.constant dense<0.000000e+00> : vector<1x8xf32>
    %65 = vector.multi_reduction <add>, %64, %cst_26 [2] : vector<1x8x8xf32> to vector<1x8xf32>
    %66 = vector.shape_cast %65 : vector<1x8xf32> to vector<1x8x1xf32>
    %67 = vector.broadcast %66 : vector<1x8x1xf32> to vector<1x8x8xf32>
    %68 = arith.divf %64, %67 : vector<1x8x8xf32>
    %69 = vector.extract_strided_slice %11 {offsets = [0, 0, 24], sizes = [1, 8, 8], strides = [1, 1, 1]} : vector<1x8x32xf32> to vector<1x8x8xf32>
    "tpu.trace_start"() <{level = 10 : i32, message = "bst,btd->bsd"}> : () -> ()
    %cst_27 = arith.constant dense<0.000000e+00> : vector<1x8x8xf32>
    %70 = tpu.matmul %68, %69, %cst_27 {dimension_numbers = #tpu.dot_dimension_numbers<[2], [1], [1], [2], [0, 0, 0, 1, 1, 2], [0], [0]>} : vector<1x8x8xf32>, vector<1x8x8xf32>, vector<1x8x8xf32> -> vector<1x8x8xf32>
    "tpu.trace_stop"() : () -> ()
    %c0_28 = arith.constant 0 : index
    %c0_29 = arith.constant 0 : index
    %c24 = arith.constant 24 : index
    %71 = vector.load %arg15[%c0_28, %c0_29, %c24] : memref<1x8x32xf32, #tpu.memory_space<vmem>>, vector<1x8x8xf32>
    tpu.vector_store %arg15[%c0_28, %c0_29, %c24], %70 {strides = array<i32>} : memref<1x8x32xf32, #tpu.memory_space<vmem>>, vector<1x8x8xf32>,
    %c0_30 = arith.constant 0 : index
    %c0_31 = arith.constant 0 : index
    %c0_32 = arith.constant 0 : index
    %72 = vector.load %arg15[%c0_30, %c0_31, %c0_32] : memref<1x8x32xf32, #tpu.memory_space<vmem>>, vector<1x8x32xf32>
    %73 = vector.shape_cast %72 : vector<1x8x32xf32> to vector<8x32xf32>
    %c0_33 = arith.constant 0 : index
    %c0_34 = arith.constant 0 : index
    %74 = vector.load %arg4[%c0_33, %c0_34] : memref<32x32xf32, #tpu.memory_space<vmem>>, vector<32x32xf32>
    %cst_35 = arith.constant dense<0.000000e+00> : vector<8x32xf32>
    %75 = tpu.matmul %73, %74, %cst_35 {dimension_numbers = #tpu.dot_dimension_numbers<[1], [0], [0], [1], [0, 0, 1, 1], [], []>} : vector<8x32xf32>, vector<32x32xf32>, vector<8x32xf32> -> vector<8x32xf32>
    %c0_36 = arith.constant 0 : index
    %c0_37 = arith.constant 0 : index
    %76 = vector.load %arg5[%c0_36, %c0_37] : memref<1x32xf32, #tpu.memory_space<vmem>>, vector<1x32xf32>
    %77 = vector.broadcast %76 : vector<1x32xf32> to vector<8x32xf32>
    %78 = arith.addf %75, %77 : vector<8x32xf32>
    %79 = arith.addf %78, %0 : vector<8x32xf32>
    %c0_38 = arith.constant 0 : index
    %c0_39 = arith.constant 0 : index
    %80 = vector.load %arg6[%c0_38, %c0_39] : memref<1x32xf32, #tpu.memory_space<vmem>>, vector<1x32xf32>
    %c0_40 = arith.constant 0 : index
    %c0_41 = arith.constant 0 : index
    %81 = vector.load %arg7[%c0_40, %c0_41] : memref<1x32xf32, #tpu.memory_space<vmem>>, vector<1x32xf32>
    %cst_42 = arith.constant dense<0.000000e+00> : vector<8xf32>
    %82 = vector.multi_reduction <add>, %79, %cst_42 [1] : vector<8x32xf32> to vector<8xf32>
    %83 = vector.shape_cast %82 : vector<8xf32> to vector<8x1xf32>
    %cst_43 = arith.constant 3.200000e+01 : f32
    %84 = vector.broadcast %cst_43 : f32 to vector<8x1xf32>
    %85 = arith.divf %83, %84 : vector<8x1xf32>
    %86 = vector.broadcast %85 : vector<8x1xf32> to vector<8x32xf32>
    %87 = arith.subf %79, %86 : vector<8x32xf32>
    %88 = arith.mulf %87, %87 : vector<8x32xf32>
    %cst_44 = arith.constant dense<0.000000e+00> : vector<8xf32>
    %89 = vector.multi_reduction <add>, %88, %cst_44 [1] : vector<8x32xf32> to vector<8xf32>
    %90 = vector.shape_cast %89 : vector<8xf32> to vector<8x1xf32>
    %cst_45 = arith.constant 3.200000e+01 : f32
    %91 = vector.broadcast %cst_45 : f32 to vector<8x1xf32>
    %92 = arith.divf %90, %91 : vector<8x1xf32>
    %93 = vector.broadcast %85 : vector<8x1xf32> to vector<8x32xf32>
    %94 = arith.subf %79, %93 : vector<8x32xf32>
    %cst_46 = arith.constant 9.99999974E-6 : f32
    %95 = vector.broadcast %cst_46 : f32 to vector<8x1xf32>
    %96 = arith.addf %92, %95 : vector<8x1xf32>
    %97 = math.rsqrt %96 : vector<8x1xf32>
    %98 = vector.broadcast %97 : vector<8x1xf32> to vector<8x32xf32>
    %99 = arith.mulf %94, %98 : vector<8x32xf32>
    %100 = vector.broadcast %80 : vector<1x32xf32> to vector<8x32xf32>
    %101 = arith.mulf %99, %100 : vector<8x32xf32>
    %102 = vector.broadcast %81 : vector<1x32xf32> to vector<8x32xf32>
    %103 = arith.addf %101, %102 : vector<8x32xf32>
    %c0_47 = arith.constant 0 : index
    %c0_48 = arith.constant 0 : index
    %104 = vector.load %arg8[%c0_47, %c0_48] : memref<32x64xf32, #tpu.memory_space<vmem>>, vector<32x64xf32>
    %cst_49 = arith.constant dense<0.000000e+00> : vector<8x64xf32>
    %105 = tpu.matmul %103, %104, %cst_49 {dimension_numbers = #tpu.dot_dimension_numbers<[1], [0], [0], [1], [0, 0, 1, 1], [], []>} : vector<8x32xf32>, vector<32x64xf32>, vector<8x64xf32> -> vector<8x64xf32>
    %c0_50 = arith.constant 0 : index
    %c0_51 = arith.constant 0 : index
    %106 = vector.load %arg9[%c0_50, %c0_51] : memref<1x64xf32, #tpu.memory_space<vmem>>, vector<1x64xf32>
    %107 = vector.broadcast %106 : vector<1x64xf32> to vector<8x64xf32>
    %108 = arith.addf %105, %107 : vector<8x64xf32>
    %cst_52 = arith.constant 0.000000e+00 : f32
    %109 = vector.broadcast %cst_52 : f32 to vector<8x64xf32>
    %110 = arith.maximumf %108, %109 : vector<8x64xf32>
    %c0_53 = arith.constant 0 : index
    %c0_54 = arith.constant 0 : index
    %111 = vector.load %arg10[%c0_53, %c0_54] : memref<64x32xf32, #tpu.memory_space<vmem>>, vector<64x32xf32>
    %cst_55 = arith.constant dense<0.000000e+00> : vector<8x32xf32>
    %112 = tpu.matmul %110, %111, %cst_55 {dimension_numbers = #tpu.dot_dimension_numbers<[1], [0], [0], [1], [0, 0, 1, 1], [], []>} : vector<8x64xf32>, vector<64x32xf32>, vector<8x32xf32> -> vector<8x32xf32>
    %c0_56 = arith.constant 0 : index
    %c0_57 = arith.constant 0 : index
    %113 = vector.load %arg11[%c0_56, %c0_57] : memref<1x32xf32, #tpu.memory_space<vmem>>, vector<1x32xf32>
    %114 = vector.broadcast %113 : vector<1x32xf32> to vector<8x32xf32>
    %115 = arith.addf %112, %114 : vector<8x32xf32>
    %116 = arith.addf %115, %103 : vector<8x32xf32>
    %c0_58 = arith.constant 0 : index
    %c0_59 = arith.constant 0 : index
    %117 = vector.load %arg12[%c0_58, %c0_59] : memref<1x32xf32, #tpu.memory_space<vmem>>, vector<1x32xf32>
    %c0_60 = arith.constant 0 : index
    %c0_61 = arith.constant 0 : index
    %118 = vector.load %arg13[%c0_60, %c0_61] : memref<1x32xf32, #tpu.memory_space<vmem>>, vector<1x32xf32>
    %cst_62 = arith.constant dense<0.000000e+00> : vector<8xf32>
    %119 = vector.multi_reduction <add>, %116, %cst_62 [1] : vector<8x32xf32> to vector<8xf32>
    %120 = vector.shape_cast %119 : vector<8xf32> to vector<8x1xf32>
    %cst_63 = arith.constant 3.200000e+01 : f32
    %121 = vector.broadcast %cst_63 : f32 to vector<8x1xf32>
    %122 = arith.divf %120, %121 : vector<8x1xf32>
    %123 = vector.broadcast %122 : vector<8x1xf32> to vector<8x32xf32>
    %124 = arith.subf %116, %123 : vector<8x32xf32>
    %125 = arith.mulf %124, %124 : vector<8x32xf32>
    %cst_64 = arith.constant dense<0.000000e+00> : vector<8xf32>
    %126 = vector.multi_reduction <add>, %125, %cst_64 [1] : vector<8x32xf32> to vector<8xf32>
    %127 = vector.shape_cast %126 : vector<8xf32> to vector<8x1xf32>
    %cst_65 = arith.constant 3.200000e+01 : f32
    %128 = vector.broadcast %cst_65 : f32 to vector<8x1xf32>
    %129 = arith.divf %127, %128 : vector<8x1xf32>
    %130 = vector.broadcast %122 : vector<8x1xf32> to vector<8x32xf32>
    %131 = arith.subf %116, %130 : vector<8x32xf32>
    %cst_66 = arith.constant 9.99999974E-6 : f32
    %132 = vector.broadcast %cst_66 : f32 to vector<8x1xf32>
    %133 = arith.addf %129, %132 : vector<8x1xf32>
    %134 = math.rsqrt %133 : vector<8x1xf32>
    %135 = vector.broadcast %134 : vector<8x1xf32> to vector<8x32xf32>
    %136 = arith.mulf %131, %135 : vector<8x32xf32>
    %137 = vector.broadcast %117 : vector<1x32xf32> to vector<8x32xf32>
    %138 = arith.mulf %136, %137 : vector<8x32xf32>
    %139 = vector.broadcast %118 : vector<1x32xf32> to vector<8x32xf32>
    %140 = arith.addf %138, %139 : vector<8x32xf32>
    %c0_67 = arith.constant 0 : index
    %c0_68 = arith.constant 0 : index
    %141 = vector.load %arg14[%c0_67, %c0_68] : memref<8x32xf32, #tpu.memory_space<vmem>>, vector<8x32xf32>
    tpu.vector_store %arg14[%c0_67, %c0_68], %140 {strides = array<i32>} : memref<8x32xf32, #tpu.memory_space<vmem>>, vector<8x32xf32>,
    return
  }
  func.func @transform_0(%arg0: i32) -> (i32, i32) {
    %c0_i32 = arith.constant 0 : i32
    %c0_i32_0 = arith.constant 0 : i32
    return %arg0, %c0_i32 : i32, i32
  }
  func.func @transform_1(%arg0: i32) -> (i32, i32) {
    %c0_i32 = arith.constant 0 : i32
    %c0_i32_0 = arith.constant 0 : i32
    %c0_i32_1 = arith.constant 0 : i32
    return %c0_i32, %c0_i32_0 : i32, i32
  }
  func.func @transform_2(%arg0: i32) -> (i32, i32) {
    %c0_i32 = arith.constant 0 : i32
    %c0_i32_0 = arith.constant 0 : i32
    %c0_i32_1 = arith.constant 0 : i32
    return %c0_i32, %c0_i32_0 : i32, i32
  }
  func.func @transform_3(%arg0: i32) -> (i32, i32) {
    %c0_i32 = arith.constant 0 : i32
    %c0_i32_0 = arith.constant 0 : i32
    %c0_i32_1 = arith.constant 0 : i32
    return %c0_i32, %c0_i32_0 : i32, i32
  }
  func.func @transform_4(%arg0: i32) -> (i32, i32) {
    %c0_i32 = arith.constant 0 : i32
    %c0_i32_0 = arith.constant 0 : i32
    %c0_i32_1 = arith.constant 0 : i32
    return %c0_i32, %c0_i32_0 : i32, i32
  }
  func.func @transform_5(%arg0: i32) -> (i32, i32) {
    %c0_i32 = arith.constant 0 : i32
    %c0_i32_0 = arith.constant 0 : i32
    %c0_i32_1 = arith.constant 0 : i32
    return %c0_i32, %c0_i32_0 : i32, i32
  }
  func.func @transform_6(%arg0: i32) -> (i32, i32) {
    %c0_i32 = arith.constant 0 : i32
    %c0_i32_0 = arith.constant 0 : i32
    %c0_i32_1 = arith.constant 0 : i32
    return %c0_i32, %c0_i32_0 : i32, i32
  }
  func.func @transform_7(%arg0: i32) -> (i32, i32) {
    %c0_i32 = arith.constant 0 : i32
    %c0_i32_0 = arith.constant 0 : i32
    %c0_i32_1 = arith.constant 0 : i32
    return %c0_i32, %c0_i32_0 : i32, i32
  }
  func.func @transform_8(%arg0: i32) -> (i32, i32) {
    %c0_i32 = arith.constant 0 : i32
    %c0_i32_0 = arith.constant 0 : i32
    %c0_i32_1 = arith.constant 0 : i32
    return %c0_i32, %c0_i32_0 : i32, i32
  }
  func.func @transform_9(%arg0: i32) -> (i32, i32) {
    %c0_i32 = arith.constant 0 : i32
    %c0_i32_0 = arith.constant 0 : i32
    %c0_i32_1 = arith.constant 0 : i32
    return %c0_i32, %c0_i32_0 : i32, i32
  }
  func.func @transform_10(%arg0: i32) -> (i32, i32) {
    %c0_i32 = arith.constant 0 : i32
    %c0_i32_0 = arith.constant 0 : i32
    %c0_i32_1 = arith.constant 0 : i32
    return %c0_i32, %c0_i32_0 : i32, i32
  }
  func.func @transform_11(%arg0: i32) -> (i32, i32) {
    %c0_i32 = arith.constant 0 : i32
    %c0_i32_0 = arith.constant 0 : i32
    %c0_i32_1 = arith.constant 0 : i32
    return %c0_i32, %c0_i32_0 : i32, i32
  }
  func.func @transform_12(%arg0: i32) -> (i32, i32) {
    %c0_i32 = arith.constant 0 : i32
    %c0_i32_0 = arith.constant 0 : i32
    %c0_i32_1 = arith.constant 0 : i32
    return %c0_i32, %c0_i32_0 : i32, i32
  }
  func.func @transform_13(%arg0: i32) -> (i32, i32) {
    %c0_i32 = arith.constant 0 : i32
    %c0_i32_0 = arith.constant 0 : i32
    return %arg0, %c0_i32 : i32, i32
  }
}

</mosaic_0001>

<bundles_post_ra>
// kernel: tpu_custom_call.1
= control target key start
LH: loop header
LB: loop body
LE: loop exit
PB: predicated region body
PF: predicated region fallthrough
CT: control target
= control target key end

     0   :  { %s2714_s0 = inlined_call_operand.hbm [shape: f32[16,32], index: 0, kind: input, shape index: {}]   ;;  %s2715_s1 = inlined_call_operand.vmem [shape: f32[32,96], index: 1, kind: input, shape index: {}]   ;;  %s2716_s2 = inlined_call_operand.vmem [shape: f32[1,96], index: 2, kind: input, shape index: {}]   ;;  %s2717_s3 = inlined_call_operand.vmem [shape: f32[32,32], index: 3, kind: input, shape index: {}]   ;;  %s2718_s4 = inlined_call_operand.vmem [shape: f32[1,32], index: 4, kind: input, shape index: {}]   ;;  %s2719_s5 = inlined_call_operand.hbm [shape: f32[1,32], index: 5, kind: input, shape index: {}]   ;;  %s2720_s6 = inlined_call_operand.hbm [shape: f32[1,32], index: 6, kind: input, shape index: {}]   ;;  %s2721_s7 = inlined_call_operand.vmem [shape: f32[32,64], index: 7, kind: input, shape index: {}]   ;;  %s2722_s8 = inlined_call_operand.hbm [shape: f32[1,64], index: 8, kind: input, shape index: {}]   ;;  %s2723_s9 = inlined_call_operand.vmem [shape: f32[64,32], index: 9, kind: input, shape index: {}]   ;;  %s2724_s10 = inlined_call_operand.vmem [shape: f32[1,32], index: 10, kind: input, shape index: {}]   ;;  %s2725_s11 = inlined_call_operand.vmem [shape: f32[1,32], index: 11, kind: input, shape index: {}]   ;;  %s2726_s12 = inlined_call_operand.vmem [shape: f32[1,32], index: 12, kind: input, shape index: {}]   ;;  %s2727_s13 = inlined_call_operand.hbm [shape: f32[16,32], index: 13, kind: output, shape index: {}]  }
   0x1   :  { %2734 = sst [smem:[#allocation18_spill]] %s2714_s0 }
   0x2   :  { %2735 = sst [smem:[#allocation19_spill]] %s2715_s1 }
   0x3   :  { %2736 = sst [smem:[#allocation20_spill]] %s2725_s11 }
   0x4   :  { %2737 = sst [smem:[#allocation21_spill]] %s2726_s12 }
   0x5   :  { %2738 = sst [smem:[#allocation22_spill]] %s2727_s13 }
   0x6   :  { %18 = vsyncpa [#allocation4], 0 }
   0x7   :  { %20 = vsyncpa [#allocation4 + $0x1], 0 }
   0x8   :  { %21 = vsyncpa [#allocation7], 0 }
   0x9   :  { %22 = vsyncpa [#allocation10], 0 }
   0xa   :  { %23 = vsyncpa [#allocation5], 0 }
   0xb   :  { %25 = vsyncpa [#allocation5 + $0x1], 0  ;;  %s2293_s25 = smov 0   ;;  %s2295_s26 = smov 0  }
   0xc   :  { %s2297_s27 = smov 0   ;;  %s2299_s28 = smov 0  }
   0xd LB: > { %2739 = sst [smem:[#allocation16_spill]] %s2187_s25  ;;  %s2314_s29 = sadd.s32 4294967295, %s2199_s28   ;;  %s2199_s28 = sphi %s2299_s28, %s2767_s28   ;;  %s2195_s27 = sphi %s2297_s27, %s2766_s27   ;;  %s2191_s26 = sphi %s2295_s26, %s2765_s26   ;;  %s2187_s25 = sphi %s2293_s25, %s2764_s25  }
   0xe   : > { %s1693_s30 = sadd.s32 4294967294, %s2199_s28   ;;  %p51_p0 = scmp.ne.s32.totalorder %s2191_s26, %s2187_s25 }
   0xf   : > { %p2731_p1 = scmp.eq.s32.totalorder %s2314_s29, 0  ;;  %p333_p3 = scmp.eq.s32.totalorder %s1693_s30, 1 }
  0x10   : > { %p1694_p5 = scmp.ge.s32.totalorder %s2199_s28, 1  ;;  %p340_p7 = scmp.lt.s32.totalorder %s2199_s28, 3 }
  0x11   : > { %p2323_p4 = por %p2731_p1, %p51_p0  ;;  %p2328_p6 = por %p333_p3, %p51_p0 }
  0x12   : > { %p2333_p8 = pnand %p1694_p5, %p340_p7  ;;  %s2201_s17 = smov [#allocation6]  }
  0x13   : > { %s2740_s14 = scalar_select %p2323_p4, 1, 0 }
  0x14   : > { %s2741_s15 = scalar_select %p2328_p6, 1, 0 }
  0x15   : > { %s2743_s16 = scalar_select %p2333_p8, 1, 0 }
  0x16   : > { %2742 = sst [smem:[#allocation17_spill]] %s2741_s15  ;;  %s365_s18 = sshll.u32 %s2201_s17, 4  ;;  %s366_s18 = int_to_ptr.vmem [resolvable:$true] %s365_s18 }
  0x17   : > { %p1913_p10 = pneg %p2333_p8  ;;  %s2202_s19 = smov [#allocation8]  }
  0x18   : > { %s376_s20 = sshll.u32 %s2202_s19, 4  ;;  %s2203_s22 = smov [#allocation9]   ;;  %s2346_s20 = int_to_ptr.vmem [resolvable:$true] %s376_s20 }
  0x19   : > { %p2342_p11 = pnand %p1913_p10, %p2731_p1  ;;  %s390_s23 = sshll.u32 %s2203_s22, 4  ;;  %s2348_s23 = int_to_ptr.vmem [resolvable:$true] %s390_s23 }
  0x1a   : > { %s2011_s17 = scalar_lea.hbm %s2719_s5, 16 }
  0x1b   : > { %p2012_p12 = scmp.ne.s32.totalorder %s2719_s5, %s2011_s17  ;;  %p2358_p13 = pneg %p2342_p11 }
  0x1c   : > { %p2018_p5 = scmp.lt.u32.totalorder %s2011_s17, %s2719_s5 }
  0x1d   : > { %p2014_p0 = pnand %p2358_p13, %p2012_p12 }
  0x1f   : > { %p2015_p3 = pneg %p2014_p0 }
  0x21   : > { %p2020_p7 = pnand %p2018_p5, %p2015_p3 }
  0x23   : > { %2023 = shalt.err (!%p2020_p7)
}
  0x24   : > { %s2024_s24 = scalar_lea.vmem %s366_s18, 16  ;;  %s2031_s25 = scalar_lea.vmem %s366_s18, 32 }
  0x25   : > { %p2025_p10 = scmp.ne.s32.totalorder %s366_s18, %s2024_s24  ;;  %p2032_p2 = scmp.lt.s32.totalorder %s366_s18, %s366_s18 }
  0x26   : > { %p2033_p6 = scmp.lt.s32.totalorder %s2031_s25, %s2024_s24 }
  0x27   : > { %p2027_p9 = pnand %p2025_p10, %p2358_p13 }
  0x28   : > { %p2034_p4 = por %p2033_p6, %p2032_p2 }
  0x29   : > { %p2028_p1 = pneg %p2027_p9 }
  0x2b   : > { %p2035_p8 = pnand %p2034_p4, %p2028_p1 }
  0x2d   : > { %2038 = shalt.err (!%p2035_p8)
}
  0x2e   : > { %1916 = dma.hbm_to_vmem [thread:$0]  (!%p2342_p11), %s2719_s5, 16, %s366_s18, [#allocation7]  }
  0x2f   : > { %s2039_s22 = scalar_lea.hbm %s2720_s6, 16 }
  0x30   : > { %p2040_p9 = scmp.ne.s32.totalorder %s2720_s6, %s2039_s22  ;;  %p2046_p1 = scmp.lt.u32.totalorder %s2039_s22, %s2720_s6 }
  0x32   : > { %p2042_p12 = pnand %p2040_p9, %p2358_p13 }
  0x34   : > { %p2043_p2 = pneg %p2042_p12 }
  0x36   : > { %p2048_p4 = pnand %p2046_p1, %p2043_p2 }
  0x38   : > { %2051 = shalt.err (!%p2048_p4)
}
  0x39   : > { %s2052_s18 = scalar_lea.vmem %s2346_s20, 16  ;;  %s2059_s11 = scalar_lea.vmem %s2346_s20, 32 }
  0x3a   : > { %p2053_p6 = scmp.ne.s32.totalorder %s2346_s20, %s2052_s18  ;;  %p2060_p3 = scmp.lt.s32.totalorder %s2346_s20, %s2346_s20 }
  0x3b   : > { %p2061_p5 = scmp.lt.s32.totalorder %s2059_s11, %s2052_s18 }
  0x3c   : > { %p2055_p8 = pnand %p2053_p6, %p2358_p13 }
  0x3d   : > { %p2062_p7 = por %p2061_p5, %p2060_p3 }
  0x3e   : > { %p2056_p0 = pneg %p2055_p8 }
  0x40   : > { %p2063_p10 = pnand %p2062_p7, %p2056_p0 }
  0x42   : > { %2066 = shalt.err (!%p2063_p10)
}
  0x43   : > { %1919 = dma.hbm_to_vmem [thread:$0]  (!%p2342_p11), %s2720_s6, 16, %s2346_s20, [#allocation7]  }
  0x44   : > { %s2067_s17 = scalar_lea.hbm %s2722_s8, 16 }
  0x45   : > { %p2068_p9 = scmp.ne.s32.totalorder %s2722_s8, %s2067_s17  ;;  %p2074_p1 = scmp.lt.u32.totalorder %s2067_s17, %s2722_s8 }
  0x47   : > { %p2070_p12 = pnand %p2068_p9, %p2358_p13 }
  0x49   : > { %p2071_p2 = pneg %p2070_p12 }
  0x4b   : > { %p2076_p4 = pnand %p2074_p1, %p2071_p2 }
  0x4d   : > { %2079 = shalt.err (!%p2076_p4)
}
  0x4e   : > { %s2080_s20 = scalar_lea.vmem %s2348_s23, 16  ;;  %s2087_s11 = scalar_lea.vmem %s2348_s23, 32 }
  0x4f   : > { %p2081_p6 = scmp.ne.s32.totalorder %s2348_s23, %s2080_s20  ;;  %p2088_p3 = scmp.lt.s32.totalorder %s2348_s23, %s2348_s23 }
  0x50   : > { %p2089_p5 = scmp.lt.s32.totalorder %s2087_s11, %s2080_s20 }
  0x51   : > { %p2083_p8 = pnand %p2081_p6, %p2358_p13 }
  0x52   : > { %p2090_p7 = por %p2089_p5, %p2088_p3 }
  0x53   : > { %p2084_p0 = pneg %p2083_p8 }
  0x55   : > { %p2091_p10 = pnand %p2090_p7, %p2084_p0 }
  0x57   : > { %2094 = shalt.err (!%p2091_p10)
}
  0x58   : > { %1922 = dma.hbm_to_vmem [thread:$0]  (!%p2342_p11), %s2722_s8, 16, %s2348_s23, [#allocation10]  }
  0x59   : > { %s2423_s19 = sadd.s32 1, %s2199_s28   ;;  %s38_s30 = sadd.s32 1, %s2195_s27 }
  0x5a   : > { %s35_s21 = ssub.s32 %s2199_s28, %s2423_s19  ;;  %p45_p9 = scmp.ne.s32.totalorder %s2195_s27, %s2191_s26 }
  0x5b   : > { %p36_p13 = scmp.eq.s32.totalorder %s35_s21, 0  ;;  %p46_p12 = scmp.eq.s32.totalorder %s2199_s28, 0 }
  0x5c   : > { %p1934_p2 = scmp.lt.s32.totalorder %s2199_s28, 2  ;;  %p2746_p4 = scmp.eq.s32.totalorder %s2314_s29, 1 }
  0x5d   : > { %s2433_s13 = scalar_select %p36_p13, %s2195_s27, %s38_s30  }
  0x5e   : > { %p47_p1 = por %p46_p12, %p45_p9  ;;  %p2437_p6 = por %p2746_p4, %p45_p9 }
  0x5f   : > { %s413_s22 = sand.u32 1, %s2195_s27   ;;  %s1700_s24 = sshll.u32 %s2199_s28, 7 }
  0x60   : > { %s1699_s23 = sshll.u32 %s413_s22, 3  ;;  %s2748_s0 = sld [smem:[#allocation18_spill]] }
  0x61   : > { %s417_s11 = scalar_lea.vmem [#allocation3], %s1699_s23  ;;  %p2448_p11 = pnand %p1934_p2, %p47_p1 }
  0x62   : > { %s424_s12 = sshll.u32 %s417_s11, 4  ;;  %s414_s21 = scalar_lea.sflag [#allocation4], %s413_s22  ;;  %s2452_s12 = int_to_ptr.vmem [resolvable:$true] %s424_s12 }
  0x63   : > { %p2097_p0 = pneg %p2448_p11 }
  0x66   : > { %s2446_s20 = scalar_lea.hbm %s2748_s0, %s1700_s24  ;;  %s2100_s25 = scalar_lea.hbm %s2748_s0, 256 }
  0x67   : > { %s2095_s30 = scalar_lea.hbm %s2446_s20, 128  ;;  %p2101_p7 = scmp.lt.u32.totalorder %s2446_s20, %s2748_s0 }
  0x68   : > { %p2096_p8 = scmp.ne.s32.totalorder %s2446_s20, %s2095_s30  ;;  %p2102_p10 = scmp.lt.u32.totalorder %s2100_s25, %s2095_s30 }
  0x69   : > { %p2104_p9 = scmp.lt.u32.totalorder %s2095_s30, %s2446_s20 }
  0x6a   : > { %p2098_p3 = pnand %p2097_p0, %p2096_p8  ;;  %p2103_p13 = por %p2102_p10, %p2101_p7 }
  0x6c   : > { %p2099_p5 = pneg %p2098_p3  ;;  %p2105_p12 = por %p2104_p9, %p2103_p13 }
  0x6e   : > { %p2106_p2 = pnand %p2105_p12, %p2099_p5 }
  0x70   : > { %2109 = shalt.err (!%p2106_p2)
}
  0x71   : > { %s2110_s22 = scalar_lea.vmem %s2452_s12, 128  ;;  %s2204_s24 = smov [#allocation3]  }
  0x72   : > { %p2111_p1 = scmp.ne.s32.totalorder %s2452_s12, %s2110_s22  ;;  %s2115_s23 = sshll.u32 %s2204_s24, 4  ;;  %s2116_s23 = int_to_ptr.vmem [resolvable:$false] %s2115_s23 }
  0x73   : > { %s2117_s18 = scalar_lea.vmem %s2116_s23, 256  ;;  %p2118_p3 = scmp.lt.s32.totalorder %s2452_s12, %s2116_s23 }
  0x74   : > { %p2113_p4 = pnand %p2111_p1, %p2097_p0  ;;  %p2119_p7 = scmp.lt.s32.totalorder %s2117_s18, %s2110_s22 }
  0x76   : > { %p2114_p8 = pneg %p2113_p4  ;;  %p2120_p10 = por %p2119_p7, %p2118_p3 }
  0x78   : > { %p2121_p13 = pnand %p2120_p10, %p2114_p8 }
  0x7a   : > { %2124 = shalt.err (!%p2121_p13)
}
  0x7b   : > { %1926 = dma.hbm_to_vmem [thread:$0]  (!%p2448_p11), %s2446_s20, 128, %s2452_s12, %s414_s21  }
  0x7c   : > { %p2750_p5 = scmp.ne.s32.totalorder %s2743_s16, 0 }
  0x7d   : > { %s2482_s30 = sand.u32 (!%p2750_p5), 1, %s2191_s26   ;;  %p2751_p0 = scmp.ne.s32.totalorder (!%p2750_p5), %s2740_s14, 0 }
  0x7e   : > { %433 = sbr.rel (%p2750_p5) target bundleno = 2695 (0xa87), region = 72  ;;  %s1702_s25 = sshll.u32 (!%p2750_p5), %s2482_s30, 3 }
  0x7f   : > { %s436_s11 = scalar_lea.sflag (!%p2750_p5), [#allocation4], %s2482_s30  ;;  %s439_s22 = scalar_lea.vmem (!%p2750_p5), [#allocation3], %s1702_s25 }
  0x85   : > { %2170 = dma.done.wait (%p2751_p0), %s436_s11, 128  }
  0x86   : > { %2172 = vsyncadd (%p2751_p0), %s436_s11, 4294967168  ;;  %p2752_p11 = scmp.eq.s32.totalorder %s2314_s29, 0 }
  0x88   : > { %2174 = dma.done.wait (%p2752_p11), [#allocation7], 32   ;;  %p2753_p9 = pmov %p2752_p11 }
  0x8a   : > { %2176 = vsyncadd (%p2753_p9), [#allocation7], 4294967264  ;;  %p2754_p12 = pmov %p2753_p9 }
  0x8b   : > { %p2755_p2 = pmov %p2753_p9 }
  0x8c   : > { %2178 = dma.done.wait (%p2754_p12), [#allocation10], 16  }
  0x8d   : > { %2180 = vsyncadd (%p2755_p2), [#allocation10], 4294967280  ;;  %v2205_v0 = vmov 0.0|0.0   ;;  %vm2206_vm0 = vmmov 0   ;;  %v2207_v1 = vmov 0.0   ;;  %s2756_s1 = sld [smem:[#allocation19_spill]] }
  0x8e   : > { %1867 = vmatprep.subr.bf16.mxu1 %v2205_v0  ;;  %1783 = vmatprep.mubr.msk.f32.mxu1 %vm2206_vm0, %v2207_v1  ;;  %v2519_v8 = vld [vmem:[%s439_s22] sm:$0xff]  ;;  %vm506_vm1 = vcmask 261120   ;;  %v1707_v9 = vld [vmem:[%s2716_s2] ss:$0 sm:$0xff]  ;;  %s2208_s14 = smov 120   ;;  %s2209_s22 = smov 96  }
  0x8f   : > { %1796 = vmatprep.subr.mxu0 %v2207_v1  ;;  %1798 = vmatprep.mubr.msk.f32.mxu0 %vm2206_vm0, %v2207_v1  ;;  %s2210_s16 = smov 80   ;;  %s2211_s20 = smov 88   ;;  %vm583_vm2 = vcmask 64512   ;;  %vm915_vm3 = vcmask 130112   ;;  %vm1086_vm4 = vcmask 195712   ;;  %vm1257_vm5 = vcmask 261312  }
  0x90   : > { %s2212_s12 = smov 72   ;;  %s2213_s15 = smov 112   ;;  %vm1475_vm6 = vcmask 523264  }
  0x91   : > { %s2214_s21 = smov 104   ;;  %s2215_s24 = smov 56  }
  0x92   : > { %s2216_s23 = smov 64   ;;  %s2217_s18 = smov 48  }
  0x93   : > { %v495_v2 = vld [vmem:[%s2756_s1] sm:$0xff]  ;;  %v496_v3 = vld [vmem:[%s2756_s1 + $0x8] sm:$0xff]  ;;  %v497_v4 = vld [vmem:[%s2756_s1 + $0x10] sm:$0xff]  ;;  %s2218_s11 = smov 40   ;;  %s2759_s0 = sld [smem:[#allocation22_spill]] }
  0x94   : > { %v1868_v5 = vpack.c.bf16 %v496_v3, %v495_v2  ;;  %v498_v6 = vld [vmem:[%s2756_s1 + $0x18] sm:$0xff] }
  0x95   : > { %v1871_v7 = vpack.c.bf16 %v498_v6, %v497_v4 }
  0x96   : > { %1869 = vmatpush3.bf16.msra.mxu1 %v1868_v5 }
  0x97   : > { %1870 = vmatprep.subr.bf16.mxu1 %v2205_v0 }
  0x9a   : > { %1872 = vmatpush3.bf16.msra.mxu1 %v1871_v7 }
  0x9b   : > { %1786 = vmatprep.subr.mxu1 %v2207_v1 }
  0x9d   : > { %1784 = vmatmul.mubr.msk.f32.vlgmr.msra.gmra.mrb[0].mxu1 %vm506_vm1, %v2519_v8 }
  0x9e   : > { %1788 = vmatprep.mubr.msk.f32.mxu1 %vm2206_vm0, %v2207_v1 }
 0x170   : > { %v576_v10 = vpop.f32.mrb[0].mxu1 }
 0x171   : > { %v2529_v11 = vadd.f32 %v1707_v9, %v576_v10  ;;  %v1785_v12 = vpop.f32.mrb[1].mxu1 }
 0x172   : > { %v1261_v12 = vld [vmem:[%s2717_s3 + $0x8] sm:$0xff] }
 0x173   : > { %746 = vrot.lane.b32.xlu1 %v2529_v11, %s2208_s14  ;;  %581 = vrot.lane.b32.xlu0 %v2529_v11, %s2209_s22  ;;  %s2219_s14 = smov 8   ;;  %s1732_s22 = sshll.u32 %s2314_s29, 7 }
 0x174   : > { %s2669_s1 = scalar_lea.hbm %s2759_s0, %s1732_s22  ;;  %s2222_s29 = smov [#allocation11]  }
 0x177   : > { %919 = vrot.lane.b32.xlu1 %v2529_v11, %s2210_s16  ;;  %748 = vrot.lane.b32.xlu0 %v2529_v11, %s2211_s20  ;;  %s493_s16 = scalar_lea.vmem [#allocation11], %s1702_s25  ;;  %s2129_s25 = sshll.u32 %s2222_s29, 4  ;;  %s2130_s25 = int_to_ptr.vmem [resolvable:$false] %s2129_s25 }
 0x178   : > { %s1594_s20 = sshll.u32 %s493_s16, 4  ;;  %s2671_s20 = int_to_ptr.vmem [resolvable:$true] %s1594_s20 }
 0x179   : > { %p2132_p3 = scmp.lt.s32.totalorder %s2671_s20, %s2130_s25 }
 0x17b   : > { %1090 = vrot.lane.b32.xlu1 %v2529_v11, %s2212_s12  ;;  %917 = vrot.lane.b32.xlu0 %v2529_v11, %s2213_s15 }
 0x17f   : > { %1088 = vrot.lane.b32.xlu0 %v2529_v11, %s2214_s21  ;;  %s1581_s21 = scalar_lea.sflag [#allocation5], %s2482_s30 }
 0x1e5   : > { %v747_v13 = vpop.permute.xlu1 %746  ;;  %v582_v14 = vpop.permute.xlu0 %581 }
 0x1e6   : > { %1787 = vmatpush3.xpose.msk.msra.mxu1 %vm583_vm2, %v582_v14  ;;  %v1262_v14 = vld [vmem:[%s2717_s3 + $0x10] sm:$0xff] }
 0x1e7   : > { %1791 = vmatprep.subr.mxu1 %v2207_v1 }
 0x1e9   : > { %1789 = vmatmul.mubr.msk.f32.vlgmr.msra.gmra.mrb[2].mxu1 %vm583_vm2, %v2529_v11  ;;  %v749_v15 = vpop.permute.xlu0 %748  ;;  %v920_v16 = vpop.permute.xlu1 %919 }
 0x1ea   : > { %1797 = vmatpush3.xpose.msk.msra.mxu0 %vm583_vm2, %v749_v15  ;;  %1793 = vmatprep.mubr.msk.f32.mxu1 %vm2206_vm0, %v2207_v1  ;;  %v1263_v15 = vld [vmem:[%s2717_s3 + $0x18] sm:$0xff] }
 0x1eb   : > { %1806 = vmatprep.subr.mxu0 %v2207_v1 }
 0x1ed   : > { %1799 = vmatmul.mubr.msk.f32.vlgmr.msra.gmra.mrb[0].mxu0 %vm583_vm2, %v747_v13  ;;  %v918_v17 = vpop.permute.xlu0 %917  ;;  %v1091_v18 = vpop.permute.xlu1 %1090 }
 0x1ee   : > { %1807 = vmatpush3.xpose.msk.msra.mxu0 %vm583_vm2, %v920_v16  ;;  %1808 = vmatprep.mubr.msk.f32.mxu0 %vm2206_vm0, %v2207_v1  ;;  %v1877_v16 = vpack.c.bf16 %v1263_v15, %v1262_v14 }
 0x1ef   : > { %1816 = vmatprep.subr.mxu0 %v2207_v1 }
 0x1f1   : > { %1809 = vmatmul.mubr.msk.f32.vlgmr.msra.gmra.mrb[2].mxu0 %vm583_vm2, %v918_v17  ;;  %v1089_v19 = vpop.permute.xlu0 %1088 }
 0x1f2   : > { %1817 = vmatpush3.xpose.msk.msra.mxu0 %vm583_vm2, %v1091_v18  ;;  %1818 = vmatprep.mubr.msk.f32.mxu0 %vm2206_vm0, %v2207_v1 }
 0x1f3   : > { %1873 = vmatprep.subr.bf16.mxu0 %v2205_v0 }
 0x1f5   : > { %1819 = vmatmul.mubr.msk.f32.vlgmr.msra.gmra.mrb[4].mxu0 %vm583_vm2, %v1089_v19 }
 0x1f6   : > { %1834 = vmatprep.mubr.msk.f32.mxu0 %vm2206_vm0, %v2207_v1 }
 0x2bc   : > { %v654_v20 = vpop.f32.mrb[2].mxu1 }
 0x2bd   : > { %v1790_v21 = vpop.f32.mrb[3].mxu1  ;;  %v658_v22 = vsel %vm583_vm2, %v654_v20, -inf }
 0x2be   : > { %659 = vmax.xlane.f32.xlu1 %v658_v22 }
 0x2c0   : > { %v820_v23 = vpop.f32.mrb[0].mxu0 }
 0x2c1   : > { %v1800_v24 = vpop.f32.mrb[1].mxu0  ;;  %v824_v25 = vsel %vm583_vm2, %v820_v23, -inf }
 0x2c2   : > { %825 = vmax.xlane.f32.xlu0 %v824_v25  ;;  %v1721_v25 = vld [vmem:[%s2718_s4] ss:$0 sm:$0xff] }
 0x2c4   : > { %v991_v26 = vpop.f32.mrb[2].mxu0 }
 0x2c5   : > { %v1810_v27 = vpop.f32.mrb[3].mxu0  ;;  %v995_v28 = vsel %vm583_vm2, %v991_v26, -inf }
 0x2c6   : > { %996 = vmax.xlane.f32.xlu0 %v995_v28 }
 0x2c8   : > { %v1162_v29 = vpop.f32.mrb[4].mxu0 }
 0x2c9   : > { %v1820_v30 = vpop.f32.mrb[5].mxu0  ;;  %v1166_v31 = vsel %vm583_vm2, %v1162_v29, -inf }
 0x2ca   : > { %1167 = vmax.xlane.f32.xlu1 %v1166_v31 }
 0x2db   : > { %835 = vrot.lane.b32.xlu1 %v2529_v11, %s2215_s24  ;;  %s2125_s24 = scalar_lea.vmem %s2671_s20, 128 }
 0x2dc   : > { %p2126_p1 = scmp.ne.s32.totalorder %s2671_s20, %s2125_s24 }
 0x2de   : > { %p2127_p4 = pnand %p2126_p1, %p2437_p6 }
 0x2e0   : > { %p2128_p8 = pneg %p2127_p4 }
 0x34b   : > { %v660_v32 = vpop.xlane.xlu1 %659 }
 0x34c   : > { %v661_v33 = vsub.f32 %v654_v20, %v660_v32 }
 0x34e   : > { %v662_v34 = vmul.f32 1.442695, %v661_v33 }
 0x34f   : > { %v826_v35 = vpop.xlane.xlu0 %825 }
 0x350   : > { %1991 = vpow2.f32 %v662_v34  ;;  %v827_v36 = vsub.f32 %v820_v23, %v826_v35 }
 0x352   : > { %v828_v37 = vmul.f32 1.442695, %v827_v36  ;;  %v1376_v36 = vld [vmem:[%s2721_s7 + $0x8] sm:$0xff] }
 0x353   : > { %v997_v47 = vpop.xlane.xlu0 %996 }
 0x354   : > { %1993 = vpow2.f32 %v828_v37  ;;  %v998_v48 = vsub.f32 %v991_v26, %v997_v47  ;;  %v1465_v47 = vld [vmem:[%s2723_s9 + $0x28] sm:$0xff] }
 0x356   : > { %v999_v49 = vmul.f32 1.442695, %v998_v48 }
 0x357   : > { %v1168_v38 = vpop.xlane.xlu1 %1167 }
 0x358   : > { %v1169_v39 = vsub.f32 %v1162_v29, %v1168_v38  ;;  %v1378_v38 = vld [vmem:[%s2721_s7 + $0x18] sm:$0xff] }
 0x35a   : > { %v1992_v40 = vpop.eup %1991  ;;  %v1170_v41 = vmul.f32 1.442695, %v1169_v39 }
 0x35b   : > { %v664_v42 = vsel %vm583_vm2, %v1992_v40, 0.0  ;;  %v836_v52 = vpop.permute.xlu1 %835 }
 0x35c   : > { %1995 = vpow2.f32 %v1170_v41  ;;  %665 = vadd.xlane.f32.xlu0 %v664_v42  ;;  %v1461_v41 = vld [vmem:[%s2723_s9 + $0x8] sm:$0xff]  ;;  %v1462_v42 = vld [vmem:[%s2723_s9 + $0x10] sm:$0xff] }
 0x35d   : > { %1997 = vpow2.f32 %v999_v49 }
 0x35e   : > { %v1994_v43 = vpop.eup %1993 }
 0x35f   : > { %v830_v44 = vsel %vm583_vm2, %v1994_v43, 0.0 }
 0x360   : > { %831 = vadd.xlane.f32.xlu1 %v830_v44  ;;  %v1463_v44 = vld [vmem:[%s2723_s9 + $0x18] sm:$0xff] }
 0x366   : > { %v1996_v45 = vpop.eup %1995 }
 0x367   : > { %v1172_v46 = vsel %vm583_vm2, %v1996_v45, 0.0  ;;  %v1998_v50 = vpop.eup %1997 }
 0x368   : > { %1173 = vadd.xlane.f32.xlu1 %v1172_v46  ;;  %v1001_v51 = vsel %vm583_vm2, %v1998_v50, 0.0  ;;  %v1464_v46 = vld [vmem:[%s2723_s9 + $0x20] sm:$0xff] }
 0x369   : > { %v1892_v48 = vpack.c.bf16 %v1465_v47, %v1464_v46 }
 0x372   : > { %669 = vrot.lane.b32.xlu0 %v2529_v11, %s2216_s23  ;;  %s2757_s23 = sld [smem:[#allocation20_spill]] }
 0x379   : > { %1006 = vrot.lane.b32.xlu1 %v2529_v11, %s2217_s18  ;;  %s2220_s18 = smov 16  }
 0x391   : > { %1002 = vadd.xlane.f32.xlu0 %v1001_v51 }
 0x3a7   : > { %1177 = vrot.lane.b32.xlu0 %v2529_v11, %s2218_s11  ;;  %v1260_v11 = vld [vmem:[%s2717_s3] sm:$0xff]  ;;  %s2221_s11 = smov 24  }
 0x3a8   : > { %v1874_v13 = vpack.c.bf16 %v1261_v12, %v1260_v11 }
 0x3aa   : > { %1875 = vmatpush3.bf16.msra.mxu0 %v1874_v13 }
 0x3ab   : > { %1876 = vmatprep.subr.bf16.mxu0 %v2205_v0 }
 0x3ae   : > { %1878 = vmatpush3.bf16.msra.mxu0 %v1877_v16 }
 0x3af   : > { %1885 = vmatprep.subr.bf16.mxu0 %v2205_v0 }
 0x3e9   : > { %v666_v53 = vpop.xlane.xlu0 %665 }
 0x3ea   : > { %1999 = vrcp.f32 %v666_v53  ;;  %v1723_v53 = vld [vmem:[#allocation6] ss:$0 sm:$0xff] }
 0x3ed   : > { %v670_v54 = vpop.permute.xlu0 %669  ;;  %v832_v55 = vpop.xlane.xlu1 %831 }
 0x3ee   : > { %2001 = vrcp.f32 %v832_v55  ;;  %1792 = vmatpush3.msra.mxu1 %v670_v54  ;;  %v1724_v55 = vld [vmem:[#allocation8] ss:$0 sm:$0xff] }
 0x3ef   : > { %1801 = vmatprep.subr.mxu1 %v2207_v1 }
 0x3f4   : > { %v2000_v56 = vpop.eup %1999 }
 0x3f5   : > { %v668_v57 = vmul.f32 %v2000_v56, %v1992_v40  ;;  %v1174_v58 = vpop.xlane.xlu1 %1173  ;;  %v1460_v40 = vld [vmem:[%s2723_s9] sm:$0xff] }
 0x3f7   : > { %1794 = vmatmul.mubr.msk.f32.vlgmr.msra.gmra.mrb[4].mxu1 %vm583_vm2, %v668_v57 }
 0x3f8   : > { %v2002_v59 = vpop.eup %2001  ;;  %1802 = vmatpush3.msra.mxu1 %v836_v52  ;;  %1803 = vmatprep.mubr.msk.f32.mxu1 %vm2206_vm0, %v2207_v1 }
 0x3f9   : > { %v834_v60 = vmul.f32 %v2002_v59, %v1994_v43  ;;  %v1007_v61 = vpop.permute.xlu1 %1006  ;;  %1811 = vmatprep.subr.mxu1 %v2207_v1  ;;  %v1886_v43 = vpack.c.bf16 %v1461_v41, %v1460_v40 }
 0x3fb   : > { %1804 = vmatmul.mubr.msk.f32.vlgmr.msra.gmra.mrb[6].mxu1 %vm583_vm2, %v834_v60  ;;  %v1725_v60 = vld [vmem:[#allocation9] ss:$0 sm:$0xff] }
 0x3fc   : > { %1812 = vmatpush3.msra.mxu1 %v1007_v61  ;;  %1813 = vmatprep.mubr.msk.f32.mxu1 %vm2206_vm0, %v2207_v1 }
 0x3fd   : > { %1821 = vmatprep.subr.mxu1 %v2207_v1 }
 0x41e   : > { %v1003_v62 = vpop.xlane.xlu0 %1002 }
 0x41f   : > { %2003 = vrcp.f32 %v1003_v62 }
 0x420   : > { %2005 = vrcp.f32 %v1174_v58  ;;  %v1466_v58 = vld [vmem:[%s2723_s9 + $0x30] sm:$0xff] }
 0x422   : > { %v1178_v4 = vpop.permute.xlu0 %1177 }
 0x429   : > { %v2004_v63 = vpop.eup %2003 }
 0x42a   : > { %v1005_v2 = vmul.f32 %v2004_v63, %v1998_v50  ;;  %v2006_v3 = vpop.eup %2005 }
 0x42b   : > { %v1176_v5 = vmul.f32 %v2006_v3, %v1996_v45  ;;  %v1889_v45 = vpack.c.bf16 %v1463_v44, %v1462_v42  ;;  %v1727_v3 = vld [vmem:[%s2724_s10] ss:$0 sm:$0xff] }
 0x42c   : > { %1814 = vmatmul.mubr.msk.f32.vlgmr.msra.gmra.mrb[8].mxu1 %vm583_vm2, %v1005_v2 }
 0x42d   : > { %1822 = vmatpush3.msra.mxu1 %v1178_v4  ;;  %1823 = vmatprep.mubr.msk.f32.mxu1 %vm2206_vm0, %v2207_v1 }
 0x42e   : > { %1879 = vmatprep.subr.bf16.mxu1 %v2205_v0 }
 0x430   : > { %1824 = vmatmul.mubr.msk.f32.vlgmr.msra.gmra.mrb[10].mxu1 %vm583_vm2, %v1176_v5 }
 0x431   : > { %1845 = vmatprep.mubr.msk.f32.mxu1 %vm2206_vm0, %v2207_v1 }
 0x4ca   : > { %v741_v6 = vpop.f32.mrb[4].mxu1 }
 0x4cb   : > { %745 = vst.msk [vmem:[#allocation2] sm:$0xff] %vm583_vm2, %v741_v6  ;;  %v1795_v7 = vpop.f32.mrb[5].mxu1 }
 0x4ce   : > { %v907_v9 = vpop.f32.mrb[6].mxu1 }
 0x4cf   : > { %912 = vrot.lane.b32.xlu1 %v907_v9, %s2219_s14  ;;  %v1805_v10 = vpop.f32.mrb[7].mxu1  ;;  %s2758_s14 = sld [smem:[#allocation21_spill]] }
 0x4ff   : > { %v1078_v17 = vpop.f32.mrb[8].mxu1 }
 0x500   : > { %1083 = vrot.lane.b32.xlu0 %v1078_v17, %s2220_s18  ;;  %v1815_v18 = vpop.f32.mrb[9].mxu1 }
 0x503   : > { %v1249_v19 = vpop.f32.mrb[10].mxu1 }
 0x504   : > { %1254 = vrot.lane.b32.xlu1 %v1249_v19, %s2221_s11  ;;  %v1825_v20 = vpop.f32.mrb[11].mxu1  ;;  %v1729_v19 = vld [vmem:[%s2757_s23] ss:$0 sm:$0xff]  ;;  %s2131_s23 = scalar_lea.vmem %s2130_s25, 256 }
 0x505   : > { %p2133_p7 = scmp.lt.s32.totalorder %s2131_s23, %s2125_s24 }
 0x507   : > { %p2134_p10 = por %p2133_p7, %p2132_p3 }
 0x509   : > { %p2135_p13 = pnand %p2134_p10, %p2128_p8 }
 0x541   : > { %v913_v21 = vpop.permute.xlu1 %912 }
 0x542   : > { %916 = vst.msk [vmem:[#allocation2] sm:$0xff] %vm915_vm3, %v913_v21  ;;  %v1730_v21 = vld [vmem:[%s2758_s14] ss:$0 sm:$0xff] }
 0x572   : > { %v1084_v22 = vpop.permute.xlu0 %1083 }
 0x573   : > { %1087 = vst.msk [vmem:[#allocation2] sm:$0xff] %vm1086_vm4, %v1084_v22 }
 0x576   : > { %v1255_v23 = vpop.permute.xlu1 %1254 }
 0x577   : > { %1258 = vst.msk [vmem:[#allocation2] sm:$0xff] %vm1257_vm5, %v1255_v23 }
 0x57e   : > { %v1259_v24 = vld [vmem:[#allocation2] sm:$0xff] }
 0x57f   : > { %1835 = vmatmul.mubr.msk.f32.vlgmr.msra.gmra.mrb[6].mxu0 %vm506_vm1, %v1259_v24 }
 0x580   : > { %1864 = vmatprep.mubr.msk.f32.mxu0 %vm2206_vm0, %v2207_v1  ;;  %v1375_v1 = vld [vmem:[%s2721_s7] sm:$0xff]  ;;  %1887 = vmatpush3.bf16.msra.mxu0 %v1886_v43 }
 0x581   : > { %v1880_v37 = vpack.c.bf16 %v1376_v36, %v1375_v1  ;;  %1888 = vmatprep.subr.bf16.mxu0 %v2205_v0 }
 0x583   : > { %1881 = vmatpush3.bf16.msra.mxu1 %v1880_v37 }
 0x584   : > { %1882 = vmatprep.subr.bf16.mxu1 %v2205_v0  ;;  %1890 = vmatpush3.bf16.msra.mxu0 %v1889_v45 }
 0x585   : > { %1891 = vmatprep.subr.bf16.mxu0 %v2205_v0 }
 0x588   : > { %1893 = vmatpush3.bf16.msra.mxu0 %v1892_v48 }
 0x589   : > { %1894 = vmatprep.subr.bf16.mxu0 %v2205_v0  ;;  %v1467_v0 = vld [vmem:[%s2723_s9 + $0x38] sm:$0xff] }
 0x58a   : > { %v1895_v59 = vpack.c.bf16 %v1467_v0, %v1466_v58 }
 0x58c   : > { %1896 = vmatpush3.bf16.msra.mxu0 %v1895_v59 }
 0x652   : > { %v1340_v26 = vpop.f32.mrb[6].mxu0 }
 0x653   : > { %v1341_v27 = vadd.f32 %v1721_v25, %v1340_v26  ;;  %v1836_v28 = vpop.f32.mrb[7].mxu0 }
 0x655   : > { %v1344_v29 = vadd.f32 %v1341_v27, %v2519_v8  ;;  %v1377_v8 = vld [vmem:[%s2721_s7 + $0x10] sm:$0xff] }
 0x656   : > { %v1883_v39 = vpack.c.bf16 %v1378_v38, %v1377_v8 }
 0x657   : > { %v1347_v30 = vsel %vm506_vm1, %v1344_v29, 0.0 }
 0x658   : > { %1348 = vadd.xlane.f32.xlu0 %v1347_v30  ;;  %1884 = vmatpush3.bf16.msra.mxu1 %v1883_v39 }
 0x6e5   : > { %v1349_v31 = vpop.xlane.xlu0 %1348 }
 0x6e6   : > { %v1351_v32 = vmul.f32 0.03125, %v1349_v31 }
 0x6e8   : > { %v1352_v33 = vsub.f32 %v1344_v29, %v1351_v32 }
 0x6ea   : > { %v1353_v34 = vmul.f32 %v1352_v33, %v1352_v33 }
 0x6ec   : > { %v1354_v35 = vsel %vm506_vm1, %v1353_v34, 0.0 }
 0x6ed   : > { %1355 = vadd.xlane.f32.xlu1 %v1354_v35 }
 0x77a   : > { %v1356_v49 = vpop.xlane.xlu1 %1355 }
 0x77b   : > { %v1357_v50 = vmul.f32 0.03125, %v1356_v49 }
 0x77d   : > { %v1358_v51 = vadd.f32 1e-05, %v1357_v50 }
 0x77f   : > { %2007 = vrsqrt.f32 %v1358_v51 }
 0x789   : > { %v2008_v52 = vpop.eup %2007 }
 0x78a   : > { %v1360_v54 = vmul.f32 %v2008_v52, %v1352_v33 }
 0x78c   : > { %v1367_v56 = vmul.f32 %v1723_v53, %v1360_v54 }
 0x78e   : > { %v1374_v57 = vadd.f32 %v1724_v55, %v1367_v56 }
 0x790   : > { %1846 = vmatmul.mubr.msk.f32.vlgmr.msra.gmra.mrb[12].mxu1 %vm506_vm1, %v1374_v57 }
 0x863   : > { %v1455_v61 = vpop.f32.mrb[12].mxu1 }
 0x864   : > { %v1456_v62 = vadd.f32 %v1725_v60, %v1455_v61  ;;  %v1847_v63 = vpop.f32.mrb[13].mxu1 }
 0x866   : > { %v1459_v2 = vmax.f32 %v1456_v62, 0.0 }
 0x868   : > { %1865 = vmatmul.mubr.msk.f32.vlgmr.msra.gmra.mrb[8].mxu0 %vm1475_vm6, %v1459_v2 }
 0x93b   : > { %v1545_v4 = vpop.f32.mrb[8].mxu0 }
 0x93c   : > { %v1546_v5 = vadd.f32 %v1727_v3, %v1545_v4  ;;  %v1866_v6 = vpop.f32.mrb[9].mxu0 }
 0x93e   : > { %v1549_v7 = vadd.f32 %v1546_v5, %v1374_v57 }
 0x940   : > { %v1552_v9 = vsel %vm506_vm1, %v1549_v7, 0.0 }
 0x941   : > { %1553 = vadd.xlane.f32.xlu0 %v1552_v9 }
 0x9ce   : > { %v1554_v10 = vpop.xlane.xlu0 %1553 }
 0x9cf   : > { %v1555_v11 = vmul.f32 0.03125, %v1554_v10 }
 0x9d1   : > { %v1556_v12 = vsub.f32 %v1549_v7, %v1555_v11 }
 0x9d3   : > { %v1557_v13 = vmul.f32 %v1556_v12, %v1556_v12 }
 0x9d5   : > { %v1558_v14 = vsel %vm506_vm1, %v1557_v13, 0.0 }
 0x9d6   : > { %1559 = vadd.xlane.f32.xlu0 %v1558_v14 }
 0xa63   : > { %v1560_v15 = vpop.xlane.xlu0 %1559 }
 0xa64   : > { %v1561_v16 = vmul.f32 0.03125, %v1560_v15 }
 0xa66   : > { %v1562_v17 = vadd.f32 1e-05, %v1561_v16 }
 0xa68   : > { %2009 = vrsqrt.f32 %v1562_v17 }
 0xa72   : > { %v2010_v18 = vpop.eup %2009 }
 0xa73   : > { %v1564_v20 = vmul.f32 %v2010_v18, %v1556_v12 }
 0xa75   : > { %v1571_v22 = vmul.f32 %v1729_v19, %v1564_v20 }
 0xa77   : > { %v1578_v23 = vadd.f32 %v1730_v21, %v1571_v22 }
 0xa79   : > { %1579 = vst.msk [vmem:[%s493_s16] sm:$0xff] %vm506_vm1, %v1578_v23 }
 0xa7a   : > { %2138 = shalt.err (!%p2135_p13)
}
 0xa7b   : > { %s2139_s30 = scalar_lea.hbm %s2669_s1, 128  ;;  %s2143_s14 = scalar_lea.hbm %s2759_s0, 256 }
 0xa7c   : > { %p2140_p5 = scmp.ne.s32.totalorder %s2669_s1, %s2139_s30  ;;  %p2144_p9 = scmp.lt.u32.totalorder %s2669_s1, %s2759_s0 }
 0xa7d   : > { %p2145_p12 = scmp.lt.u32.totalorder %s2143_s14, %s2139_s30  ;;  %p2147_p1 = scmp.lt.u32.totalorder %s2139_s30, %s2669_s1 }
 0xa7e   : > { %p2141_p0 = pnand %p2140_p5, %p2437_p6 }
 0xa7f   : > { %p2146_p2 = por %p2145_p12, %p2144_p9 }
 0xa80   : > { %p2142_p11 = pneg %p2141_p0 }
 0xa81   : > { %p2148_p4 = por %p2147_p1, %p2146_p2 }
 0xa83   : > { %p2149_p8 = pnand %p2148_p4, %p2142_p11 }
 0xa85   : > { %2152 = shalt.err (!%p2149_p8)
}
 0xa86   : > { %1911 = dma.vmem_to_hbm [thread:$0]  (%p2437_p6), %s2671_s20, 128, %s2669_s1, %s1581_s21  }
 0xa87 PF: > { %s2760_s12 = sld [smem:[#allocation16_spill]]  ;;  %s2761_s15 = sld [smem:[#allocation17_spill]] }
 0xa88   : > { %p2763_p7 = scmp.ge.s32.totalorder %s2199_s28, 2 }
 0xa8d   : > { %s1606_s24 = sand.u32 1, %s2760_s12   ;;  %p2762_p3 = scmp.ne.s32.totalorder %s2761_s15, 0 }
 0xa8e   : > { %s1607_s29 = scalar_lea.sflag [#allocation5], %s1606_s24 }
 0xa8f   : > { %p1928_p10 = pnand %p2763_p7, %p2762_p3 }
 0xa91   : > { %2182 = dma.done.wait (!%p1928_p10), %s1607_s29, 128  }
 0xa92   : > { %2184 = vsyncadd (!%p1928_p10), %s1607_s29, 4294967168  ;;  %p28_p13 = scmp.ge.s32.totalorder %s2423_s19, 4   ;;  %s2764_s25 = smov %s2191_s26 }
 0xa93   : > { %s2765_s26 = smov %s2195_s27  ;;  %s2766_s27 = smov %s2433_s13 }
 0xa94   : > { %s2767_s28 = smov %s2423_s19  ;;  %30 = sbr.rel (!%p28_p13) target bundleno = 13 (0xd), region = 129 }
 0xa9b   :  { %1612 = vsyncpa [#allocation4], 1 }
 0xa9c   :  { %1614 = vsyncpa [#allocation4 + $0x1], 1 }
 0xa9d   :  { %1615 = vsyncpa [#allocation7], 1 }
 0xa9e   :  { %1616 = vsyncpa [#allocation10], 1 }
 0xa9f   :  { %1617 = vsyncpa [#allocation5], 1 }
 0xaa0   :  { %1619 = vsyncpa [#allocation5 + $0x1], 1 }

</bundles_post_ra>
